<compile_context>
chip_gen: v6e
topology: v6e:2x2x1
jax: 0.10.0
libtpu: 0.0.40
codegen_flags: <defaults>
</compile_context>

<pallas_src>
import functools

import jax
import jax.numpy as jnp
from jax import lax
from jax.experimental import pallas as pl
from jax.experimental.pallas import tpu as pltpu


def _round_up(x: int, m: int) -> int:
    return (x + m - 1) // m * m


def _tiles(m: int, n: int, k: int):
    """TPU-friendly tile sizes and padded dims for (M, N, K)."""
    tm = min(512, _round_up(max(m, 1), 8))
    tn = min(512, _round_up(max(n, 1), 128))
    tk = min(512, _round_up(max(k, 1), 128))
    return tm, tn, tk, _round_up(m, tm), _round_up(n, tn), _round_up(k, tk)


def _keep_threshold_u8(dropout: float) -> int:
    """uint8 threshold t such that P(bits >= t) ~= 1 - dropout."""
    return min(int(round(float(dropout) * 256.0)), 255)


def _elem_bits_u8(seed: int, n: int, k: int):
    """Deterministic per-element uint8 bits for the standard dropout mask."""
    return jax.random.bits(jax.random.PRNGKey(int(seed)), (n, k), dtype=jnp.uint8)


def _row_bits_u8(seed: int, n: int):
    """Deterministic per-row uint8 bits for the variational dropout mask."""
    return jax.random.bits(jax.random.PRNGKey(int(seed)), (n,), dtype=jnp.uint8)


def _weight_drop_linear_kernel(*refs, nk, threshold, scale, use_bits,
                               use_rowscale):
    """One (TM, TN) output tile, accumulated over K tiles.

    refs = x, w, [bits], [rowscale], bias, out, acc_scratch
    """
    refs = list(refs)
    x_ref = refs.pop(0)
    w_ref = refs.pop(0)
    bits_ref = refs.pop(0) if use_bits else None
    rs_ref = refs.pop(0) if use_rowscale else None
    b_ref, o_ref, acc_ref = refs

    k = pl.program_id(2)

    w = w_ref[...]
    if use_bits:
        # Bitwise select in compute_dtype; no upcast, no scale mul here.
        keep = bits_ref[...] >= jnp.uint8(threshold)
        w = jnp.where(keep, w, jnp.zeros_like(w))

    # Contract the last dim of both operands: (TM, TK) x (TN, TK) -> (TM, TN),
    # f32 accumulation on the MXU, no materialized W.T.
    prod = lax.dot_general(
        x_ref[...], w,
        dimension_numbers=(((1,), (1,)), ((), ())),
        preferred_element_type=jnp.float32,
    )

    @pl.when(k == 0)
    def _():
        acc_ref[...] = prod          # init with first product (no zero-store)

    @pl.when(k > 0)
    def _():
        acc_ref[...] += prod

    @pl.when(k == nk - 1)
    def _():
        acc = acc_ref[...]
        if use_rowscale:
            acc = acc * rs_ref[...]              # variational per-row 0 / 1/(1-p)
        elif scale != 1.0:
            acc = acc * jnp.float32(scale)       # uniform 1/(1-p), folded here
        o_ref[...] = (acc + b_ref[...]).astype(o_ref.dtype)


def weight_drop_linear(x, w_raw, bias, seed, *, dropout=0.0, variational=False,
                       training=True, compute_dtype=jnp.bfloat16,
                       out_dtype=None):
    """WeightDrop(nn.Linear(in, out), ['weight'], dropout).forward(x)."""
    m, k_dim = x.shape
    n, k2 = w_raw.shape
    assert k2 == k_dim, "weight / input feature mismatch"
    assert bias.shape == (n,)
    assert 0.0 <= float(dropout) < 1.0

    if out_dtype is None:
        out_dtype = compute_dtype

    # PyTorch: standard path uses training=self.training; variational path
    # hardcodes training=True.
    apply_dropout = (float(dropout) > 0.0) and (bool(training) or bool(variational))
    use_rowscale = apply_dropout and bool(variational)
    use_bits = apply_dropout and not bool(variational)

    tm, tn, tk, mp, np_, kp = _tiles(m, n, k_dim)
    nm, nn, nk = mp // tm, np_ // tn, kp // tk

    scale = (1.0 / (1.0 - float(dropout))) if apply_dropout else 1.0
    threshold = _keep_threshold_u8(dropout)

    def _pad2(a, rows, cols, dtype):
        a = a.astype(dtype)
        if a.shape == (rows, cols):          # skip the copy when tile-aligned
            return a
        return jnp.zeros((rows, cols), dtype).at[:a.shape[0], :a.shape[1]].set(a)

    xp = _pad2(x, mp, kp, compute_dtype)
    wp = _pad2(w_raw, np_, kp, compute_dtype)
    bp = _pad2(bias.reshape(1, n), 1, np_, jnp.float32)

    operands = [xp, wp]
    in_specs = [
        pl.BlockSpec((tm, tk), lambda i, j, k: (i, k)),   # x
        pl.BlockSpec((tn, tk), lambda i, j, k: (j, k)),   # W_raw (out, in)
    ]
    if use_bits:
        bits = _pad2(_elem_bits_u8(seed, n, k_dim), np_, kp, jnp.uint8)
        operands.append(bits)
        in_specs.append(pl.BlockSpec((tn, tk), lambda i, j, k: (j, k)))
    if use_rowscale:
        row_keep = _row_bits_u8(seed, n) >= jnp.uint8(threshold)
        rowscale = jnp.where(row_keep, jnp.float32(scale), jnp.float32(0.0))
        operands.append(_pad2(rowscale.reshape(1, n), 1, np_, jnp.float32))
        in_specs.append(pl.BlockSpec((1, tn), lambda i, j, k: (0, j)))
    operands.append(bp)
    in_specs.append(pl.BlockSpec((1, tn), lambda i, j, k: (0, j)))

    kernel = functools.partial(
        _weight_drop_linear_kernel,
        nk=nk, threshold=threshold, scale=scale,
        use_bits=use_bits, use_rowscale=use_rowscale,
    )

    yp = pl.pallas_call(
        kernel,
        out_shape=jax.ShapeDtypeStruct((mp, np_), out_dtype),
        grid=(nm, nn, nk),
        in_specs=in_specs,
        out_specs=pl.BlockSpec((tm, tn), lambda i, j, k: (i, j)),
        scratch_shapes=[pltpu.VMEM((tm, tn), jnp.float32)],
        compiler_params=pltpu.CompilerParams(
            dimension_semantics=("parallel", "parallel", "arbitrary")),
    )(*operands)

    return yp[:m, :n]


def weight_drop_linear_ref(x, w_raw, bias, seed, *, dropout=0.0,
                           variational=False, training=True):
    """Pure-JAX reference using the same bits/threshold as the kernel."""
    n, k_dim = w_raw.shape
    w = w_raw.astype(jnp.float32)
    apply_dropout = (float(dropout) > 0.0) and (bool(training) or bool(variational))
    if apply_dropout:
        thr = jnp.uint8(_keep_threshold_u8(dropout))
        scale = jnp.float32(1.0 / (1.0 - float(dropout)))
        if variational:
            keep = (_row_bits_u8(seed, n) >= thr)[:, None]
        else:
            keep = _elem_bits_u8(seed, n, k_dim) >= thr
        w = jnp.where(keep, w * scale, jnp.float32(0.0))
    return x.astype(jnp.float32) @ w.T + bias[None, :].astype(jnp.float32)


if __name__ == "__main__":
    # Shapes consistent with the module's Linear usage: Linear(in=32, out=32).
    batch, in_features, out_features = 8, 32, 32

    key = jax.random.PRNGKey(0)
    kx, kw, kb = jax.random.split(key, 3)
    x = jax.random.normal(kx, (batch, in_features), dtype=jnp.float32)
    w_raw = jax.random.normal(kw, (out_features, in_features), dtype=jnp.float32) * 0.1
    bias = jax.random.normal(kb, (out_features,), dtype=jnp.float32) * 0.1

    ref0 = x @ w_raw.T + bias[None, :]

    # 1) dropout = 0, f32 compute: must match a plain linear layer.
    y0 = jax.block_until_ready(weight_drop_linear(
        x, w_raw, bias, seed=0, dropout=0.0, training=True,
        compute_dtype=jnp.float32))
    assert jnp.allclose(y0, ref0, atol=1e-4, rtol=1e-4), "p=0 path mismatch"

    # 2) standard weight-drop, p = 0.5, bf16 compute / f32 accumulate.
    y1 = jax.block_until_ready(weight_drop_linear(
        x, w_raw, bias, seed=123, dropout=0.5, variational=False, training=True))
    r1 = weight_drop_linear_ref(x, w_raw, bias, seed=123, dropout=0.5,
                                variational=False, training=True)
    assert y1.shape == (batch, out_features)
    assert jnp.allclose(y1.astype(jnp.float32), r1, atol=5e-2, rtol=5e-2), \
        "standard dropout mismatch"

    # 3) variational weight-drop, p = 0.5 (per-row mask on raw weight).
    y2 = jax.block_until_ready(weight_drop_linear(
        x, w_raw, bias, seed=456, dropout=0.5, variational=True, training=True))
    r2 = weight_drop_linear_ref(x, w_raw, bias, seed=456, dropout=0.5,
                                variational=True, training=True)
    assert y2.shape == (batch, out_features)
    assert jnp.allclose(y2.astype(jnp.float32), r2, atol=5e-2, rtol=5e-2), \
        "variational dropout mismatch"

    # 4) eval mode, standard path: dropout must be a no-op (training=False).
    y3 = jax.block_until_ready(weight_drop_linear(
        x, w_raw, bias, seed=789, dropout=0.5, variational=False,
        training=False, compute_dtype=jnp.float32))
    assert jnp.allclose(y3, ref0, atol=1e-4, rtol=1e-4), "eval-mode path mismatch"

    print("KERNEL_OK")
</pallas_src>

<mosaic_0001>
module attributes {stable_mosaic.version = 11 : i64} {
  func.func @_weight_drop_linear_kernel(%arg0: i32, %arg1: i32, %arg2: i32, %arg3: memref<8x128xf32, #tpu.memory_space<vmem>>, %arg4: memref<128x128xf32, #tpu.memory_space<vmem>>, %arg5: memref<1x128xf32, #tpu.memory_space<vmem>>, %arg6: memref<8x128xf32, #tpu.memory_space<vmem>>, %arg7: memref<8x128xf32, #tpu.memory_space<vmem>>) attributes {dimension_semantics = [#tpu.dimension_semantics<parallel>, #tpu.dimension_semantics<parallel>, #tpu.dimension_semantics<arbitrary>], iteration_bounds = array<i64: 1, 1, 1>, scalar_prefetch = 0 : i64, scratch_operands = 1 : i64, tpu.core_type = #tpu.core_type<tc>, window_params = [{transform_indices = @transform_0, window_bounds = array<i64: 8, 128>}, {transform_indices = @transform_1, window_bounds = array<i64: 128, 128>}, {transform_indices = @transform_2, window_bounds = array<i64: 1, 128>}, {transform_indices = @transform_3, window_bounds = array<i64: 8, 128>}]} {
    %c0 = arith.constant 0 : index
    %c0_0 = arith.constant 0 : index
    %0 = vector.load %arg4[%c0, %c0_0] : memref<128x128xf32, #tpu.memory_space<vmem>>, vector<128x128xf32>
    %c0_1 = arith.constant 0 : index
    %c0_2 = arith.constant 0 : index
    %1 = vector.load %arg3[%c0_1, %c0_2] : memref<8x128xf32, #tpu.memory_space<vmem>>, vector<8x128xf32>
    %cst = arith.constant dense<0.000000e+00> : vector<8x128xf32>
    %2 = tpu.matmul %1, %0, %cst {dimension_numbers = #tpu.dot_dimension_numbers<[1], [1], [0], [0], [0, 0, 1, 0], [], []>} : vector<8x128xf32>, vector<128x128xf32>, vector<8x128xf32> -> vector<8x128xf32>
    %c0_i32 = arith.constant 0 : i32
    %3 = arith.cmpi eq, %arg2, %c0_i32 : i32
    %4 = arith.extui %3 : i1 to i32
    %c0_i32_3 = arith.constant 0 : i32
    %5 = arith.cmpi ne, %4, %c0_i32_3 : i32
    scf.if %5 {
      %c0_8 = arith.constant 0 : index
      %c0_9 = arith.constant 0 : index
      %12 = vector.load %arg7[%c0_8, %c0_9] : memref<8x128xf32, #tpu.memory_space<vmem>>, vector<8x128xf32>
      tpu.vector_store %arg7[%c0_8, %c0_9], %2 {strides = array<i32>} : memref<8x128xf32, #tpu.memory_space<vmem>>, vector<8x128xf32>,
    } else {
    }
    %c0_i32_4 = arith.constant 0 : i32
    %6 = arith.cmpi sgt, %arg2, %c0_i32_4 : i32
    %7 = arith.extui %6 : i1 to i32
    %c0_i32_5 = arith.constant 0 : i32
    %8 = arith.cmpi ne, %7, %c0_i32_5 : i32
    scf.if %8 {
      %c0_8 = arith.constant 0 : index
      %c0_9 = arith.constant 0 : index
      %12 = vector.load %arg7[%c0_8, %c0_9] : memref<8x128xf32, #tpu.memory_space<vmem>>, vector<8x128xf32>
      %13 = arith.addf %12, %2 : vector<8x128xf32>
      %c0_10 = arith.constant 0 : index
      %c0_11 = arith.constant 0 : index
      %14 = vector.load %arg7[%c0_10, %c0_11] : memref<8x128xf32, #tpu.memory_space<vmem>>, vector<8x128xf32>
      tpu.vector_store %arg7[%c0_10, %c0_11], %13 {strides = array<i32>} : memref<8x128xf32, #tpu.memory_space<vmem>>, vector<8x128xf32>,
    } else {
    }
    %c0_i32_6 = arith.constant 0 : i32
    %9 = arith.cmpi eq, %arg2, %c0_i32_6 : i32
    %10 = arith.extui %9 : i1 to i32
    %c0_i32_7 = arith.constant 0 : i32
    %11 = arith.cmpi ne, %10, %c0_i32_7 : i32
    scf.if %11 {
      %c0_8 = arith.constant 0 : index
      %c0_9 = arith.constant 0 : index
      %12 = vector.load %arg7[%c0_8, %c0_9] : memref<8x128xf32, #tpu.memory_space<vmem>>, vector<8x128xf32>
      %c0_10 = arith.constant 0 : index
      %c0_11 = arith.constant 0 : index
      %13 = vector.load %arg5[%c0_10, %c0_11] : memref<1x128xf32, #tpu.memory_space<vmem>>, vector<1x128xf32>
      %14 = vector.broadcast %13 : vector<1x128xf32> to vector<8x128xf32>
      %15 = arith.addf %12, %14 : vector<8x128xf32>
      %c0_12 = arith.constant 0 : index
      %c0_13 = arith.constant 0 : index
      %16 = vector.load %arg6[%c0_12, %c0_13] : memref<8x128xf32, #tpu.memory_space<vmem>>, vector<8x128xf32>
      tpu.vector_store %arg6[%c0_12, %c0_13], %15 {strides = array<i32>} : memref<8x128xf32, #tpu.memory_space<vmem>>, vector<8x128xf32>,
    } else {
    }
    return
  }
  func.func @transform_0(%arg0: i32, %arg1: i32, %arg2: i32) -> (i32, i32) {
    %c0_i32 = arith.constant 0 : i32
    return %arg0, %arg2 : i32, i32
  }
  func.func @transform_1(%arg0: i32, %arg1: i32, %arg2: i32) -> (i32, i32) {
    %c0_i32 = arith.constant 0 : i32
    return %arg1, %arg2 : i32, i32
  }
  func.func @transform_2(%arg0: i32, %arg1: i32, %arg2: i32) -> (i32, i32) {
    %c0_i32 = arith.constant 0 : i32
    %c0_i32_0 = arith.constant 0 : i32
    return %c0_i32, %arg1 : i32, i32
  }
  func.func @transform_3(%arg0: i32, %arg1: i32, %arg2: i32) -> (i32, i32) {
    %c0_i32 = arith.constant 0 : i32
    return %arg0, %arg1 : i32, i32
  }
}

</mosaic_0001>

<bundles_post_ra>
// kernel: tpu_custom_call.1
= control target key start
LH: loop header
LB: loop body
LE: loop exit
PB: predicated region body
PF: predicated region fallthrough
CT: control target
= control target key end

     0   :  { %8 = vsyncpa [#allocation4], 0  ;;  %s334_s0 = inlined_call_operand.hbm [shape: f32[8,128], index: 0, kind: input, shape index: {}]   ;;  %s335_s1 = inlined_call_operand.hbm [shape: f32[128,128], index: 1, kind: input, shape index: {}]   ;;  %s336_s2 = inlined_call_operand.vmem [shape: f32[1,128], index: 2, kind: input, shape index: {}]   ;;  %s337_s3 = inlined_call_operand.hbm [shape: f32[8,128], index: 3, kind: output, shape index: {}]  }
   0x1   :  { %9 = vsyncpa [#allocation7], 0 }
   0x2   :  { %10 = vsyncpa [#allocation5], 0  ;;  %s295_s12 = smov [#allocation3]   ;;  %s296_s14 = smov [#allocation6]  }
   0x3   :  { %s17_s13 = sshll.u32 %s295_s12, 4  ;;  %s26_s15 = sshll.u32 %s296_s14, 4  ;;  %s18_s13 = int_to_ptr.vmem [resolvable:$true] %s17_s13  ;;  %s27_s15 = int_to_ptr.vmem [resolvable:$true] %s26_s15 }
   0x4   :  { %s237_s16 = scalar_lea.vmem %s18_s13, 128  ;;  %p242_p1 = scmp.lt.s32.totalorder %s18_s13, %s18_s13 }
   0x5   :  { %p238_p0 = scmp.ne.s32.totalorder %s18_s13, %s237_s16  ;;  %p243_p2 = scmp.lt.s32.totalorder %s237_s16, %s237_s16 }
   0x7   :  { %p244_p3 = por %p243_p2, %p242_p1 }
   0x9   :  { %p245_p4 = pnand %p244_p3, %p238_p0 }
   0xb   :  { %248 = shalt.err (!%p245_p4)
}
   0xc   :  { %20 = dma.hbm_to_vmem [thread:$0]  %s334_s0, 128, %s18_s13, [#allocation4]  }
   0xd   :  { %s257_s19 = scalar_lea.vmem %s27_s15, 2048  ;;  %p262_p6 = scmp.lt.s32.totalorder %s27_s15, %s27_s15 }
   0xe   :  { %p258_p5 = scmp.ne.s32.totalorder %s27_s15, %s257_s19  ;;  %p263_p7 = scmp.lt.s32.totalorder %s257_s19, %s257_s19 }
  0x10   :  { %p264_p8 = por %p263_p7, %p262_p6 }
  0x12   :  { %p265_p9 = pnand %p264_p8, %p258_p5 }
  0x14   :  { %268 = shalt.err (!%p265_p9)
}
  0x15   :  { %s297_s20 = smov 128   ;;  %s298_s21 = smov 8  }
  0x16   :  { %32 = dma.hbm_to_vmem [thread:$0]  %s335_s1, 2048, %s27_s15, [#allocation7], %s297_s20, %s297_s20, %s298_s21  }
  0x17   :  { %289 = dma.done.wait [#allocation4], 128  }
  0x18   :  { %290 = vsyncadd [#allocation4], 4294967168 }
  0x19   :  { %291 = dma.done.wait [#allocation7], 2048  }
  0x1a   :  { %292 = vsyncadd [#allocation7], 4294965248  ;;  %v299_v0 = vmov 0.0   ;;  %vm300_vm0 = vmmov 0   ;;  %v56_v1 = vld [vmem:[#allocation6 + $0x78] sm:$0xff]  ;;  %v55_v2 = vld [vmem:[#allocation6 + $0x70] sm:$0xff] }
  0x1b   :  { %187 = vmatprep.subr.mxu0 %v299_v0  ;;  %219 = vmatprep.mubr.msk.f32.mxu0 %vm300_vm0, %v299_v0  ;;  %v54_v3 = vld [vmem:[#allocation6 + $0x68] sm:$0xff]  ;;  %v53_v4 = vld [vmem:[#allocation6 + $0x60] sm:$0xff]  ;;  %v52_v5 = vld [vmem:[#allocation6 + $0x58] sm:$0xff]  ;;  %s301_s24 = smov [#allocation8]  }
  0x1c   :  { %188 = vmatpush3.xpose.msra.mxu0 %v56_v1  ;;  %v51_v6 = vld [vmem:[#allocation6 + $0x50] sm:$0xff]  ;;  %v50_v7 = vld [vmem:[#allocation6 + $0x48] sm:$0xff]  ;;  %v49_v8 = vld [vmem:[#allocation6 + $0x40] sm:$0xff]  ;;  %s159_s25 = sshll.u32 %s301_s24, 4  ;;  %s160_s25 = int_to_ptr.vmem [resolvable:$true] %s159_s25 }
  0x1d   :  { %189 = vmatprep.subr.mxu0 %v299_v0  ;;  %v48_v9 = vld [vmem:[#allocation6 + $0x38] sm:$0xff]  ;;  %v47_v10 = vld [vmem:[#allocation6 + $0x30] sm:$0xff]  ;;  %v46_v11 = vld [vmem:[#allocation6 + $0x28] sm:$0xff]  ;;  %s269_s26 = scalar_lea.vmem %s160_s25, 128  ;;  %p274_p11 = scmp.lt.s32.totalorder %s160_s25, %s160_s25 }
  0x1e   :  { %v45_v12 = vld [vmem:[#allocation6 + $0x20] sm:$0xff]  ;;  %v44_v13 = vld [vmem:[#allocation6 + $0x18] sm:$0xff]  ;;  %v43_v14 = vld [vmem:[#allocation6 + $0x10] sm:$0xff]  ;;  %p270_p10 = scmp.ne.s32.totalorder %s160_s25, %s269_s26  ;;  %p275_p12 = scmp.lt.s32.totalorder %s269_s26, %s269_s26 }
  0x1f   :  { %v42_v15 = vld [vmem:[#allocation6 + $0x8] sm:$0xff]  ;;  %v41_v16 = vld [vmem:[#allocation6] sm:$0xff]  ;;  %v57_v17 = vld [vmem:[#allocation3] sm:$0xff] }
  0x20   :  { %190 = vmatpush3.xpose.msra.mxu0 %v55_v2  ;;  %v169_v18 = vld [vmem:[%s336_s2] ss:$0 sm:$0xff]  ;;  %p276_p13 = por %p275_p12, %p274_p11 }
  0x21   :  { %191 = vmatprep.subr.mxu0 %v299_v0 }
  0x22   :  { %p277_p0 = pnand %p276_p13, %p270_p10 }
  0x24   :  { %192 = vmatpush3.xpose.msra.mxu0 %v54_v3 }
  0x25   :  { %193 = vmatprep.subr.mxu0 %v299_v0 }
  0x28   :  { %194 = vmatpush3.xpose.msra.mxu0 %v53_v4 }
  0x29   :  { %195 = vmatprep.subr.mxu0 %v299_v0 }
  0x2c   :  { %196 = vmatpush3.xpose.msra.mxu0 %v52_v5 }
  0x2d   :  { %197 = vmatprep.subr.mxu0 %v299_v0 }
  0x30   :  { %198 = vmatpush3.xpose.msra.mxu0 %v51_v6 }
  0x31   :  { %199 = vmatprep.subr.mxu0 %v299_v0 }
  0x34   :  { %200 = vmatpush3.xpose.msra.mxu0 %v50_v7 }
  0x35   :  { %201 = vmatprep.subr.mxu0 %v299_v0 }
  0x38   :  { %202 = vmatpush3.xpose.msra.mxu0 %v49_v8 }
  0x39   :  { %203 = vmatprep.subr.mxu0 %v299_v0 }
  0x3c   :  { %204 = vmatpush3.xpose.msra.mxu0 %v48_v9 }
  0x3d   :  { %205 = vmatprep.subr.mxu0 %v299_v0 }
  0x40   :  { %206 = vmatpush3.xpose.msra.mxu0 %v47_v10 }
  0x41   :  { %207 = vmatprep.subr.mxu0 %v299_v0 }
  0x44   :  { %208 = vmatpush3.xpose.msra.mxu0 %v46_v11 }
  0x45   :  { %209 = vmatprep.subr.mxu0 %v299_v0 }
  0x48   :  { %210 = vmatpush3.xpose.msra.mxu0 %v45_v12 }
  0x49   :  { %211 = vmatprep.subr.mxu0 %v299_v0 }
  0x4c   :  { %212 = vmatpush3.xpose.msra.mxu0 %v44_v13 }
  0x4d   :  { %213 = vmatprep.subr.mxu0 %v299_v0 }
  0x50   :  { %214 = vmatpush3.xpose.msra.mxu0 %v43_v14 }
  0x51   :  { %215 = vmatprep.subr.mxu0 %v299_v0 }
  0x54   :  { %216 = vmatpush3.xpose.msra.mxu0 %v42_v15 }
  0x55   :  { %217 = vmatprep.subr.mxu0 %v299_v0 }
  0x58   :  { %218 = vmatpush3.xpose.msra.mxu0 %v41_v16 }
  0x5b   :  { %220 = vmatmul.mubr.f32.vlgmr.msra.gmra.mxu0 %v57_v17 }
 0x11b   :  { %v124_v19 = vpop.f32.mrf.mxu0 }
 0x11c   :  { %v151_v20 = vadd.f32 %v169_v18, %v124_v19 }
 0x11d   :  { %v221_v21 = vpop.f32.mrf.mxu0 }
 0x11e   :  { %152 = vst [vmem:[#allocation8] sm:$0xff] %v151_v20 }
 0x11f   :  { %280 = shalt.err (!%p277_p0)
}
 0x120   :  { %162 = dma.vmem_to_hbm [thread:$0]  %s160_s25, 128, %s337_s3, [#allocation5]  }
 0x121   :  { %293 = dma.done.wait [#allocation5], 128  }
 0x122   :  { %294 = vsyncadd [#allocation5], 4294967168 }
 0x123   :  { %166 = vsyncpa [#allocation4], 1 }
 0x124   :  { %167 = vsyncpa [#allocation7], 1 }
 0x125   :  { %168 = vsyncpa [#allocation5], 1 }

</bundles_post_ra>
